<compile_context>
chip_gen: v5e
topology: v5e:2x2
jax: 0.10.0
libtpu: 0.0.40
codegen_flags: <defaults>
</compile_context>

<pallas_src>
import jax
import jax.numpy as jnp
from jax.experimental import pallas as pl
from jax.experimental.pallas import tpu as pltpu


def ae_forward_kernel(x_ref,
                      w_enc_ref, w_fce_ref, w_fcd_ref, w_dec_ref,
                      b_lat_ref, b_dec_ref,
                      out_ref):
    """Fused AE forward: encoder -> fc_enc -> fc_dec -> decoder.

    Weights are bf16 with layout (in, out); b_lat is (3, L) f32 holding
    [b_enc; b_fc_enc; b_fc_dec]; b_dec is (1, D_in) f32.  All matmuls
    accumulate in f32 on the MXU; bias adds and the output stay f32.
    """
    x = x_ref[...].astype(jnp.bfloat16)                                 # (TB, D_in)

    # encoder: Linear(D_in -> L)
    h = jnp.dot(x, w_enc_ref[...],
                preferred_element_type=jnp.float32) + b_lat_ref[0:1, :]  # (TB, L)

    # fc_enc: Linear(L -> L)
    z = jnp.dot(h.astype(jnp.bfloat16), w_fce_ref[...],
                preferred_element_type=jnp.float32) + b_lat_ref[1:2, :]  # (TB, L)

    # fc_dec: Linear(L -> L)
    zd = jnp.dot(z.astype(jnp.bfloat16), w_fcd_ref[...],
                 preferred_element_type=jnp.float32) + b_lat_ref[2:3, :]  # (TB, L)

    # decoder: Linear(L -> D_in)
    y = jnp.dot(zd.astype(jnp.bfloat16), w_dec_ref[...],
                preferred_element_type=jnp.float32) + b_dec_ref[...]      # (TB, D_in)

    out_ref[...] = y.astype(out_ref.dtype)


def prepare_params(params):
    """One-time layout/dtype prep, hoisted out of the per-call path.

    Transposes PyTorch (out, in) weights to (in, out), casts them to bf16,
    and packs the three latent biases into a single (3, L) f32 buffer.
    """
    L = params["w_fc_enc"].shape[0]
    d_in = params["w_enc"].shape[1]
    w_enc = jnp.asarray(params["w_enc"].T, jnp.bfloat16)      # (D_in, L)
    w_fce = jnp.asarray(params["w_fc_enc"].T, jnp.bfloat16)   # (L, L)
    w_fcd = jnp.asarray(params["w_fc_dec"].T, jnp.bfloat16)   # (L, L)
    w_dec = jnp.asarray(params["w_dec"].T, jnp.bfloat16)      # (L, D_in)
    b_lat = jnp.stack(
        [params["b_enc"], params["b_fc_enc"], params["b_fc_dec"]],
        axis=0).astype(jnp.float32)                           # (3, L)
    b_dec = params["b_dec"].reshape(1, d_in).astype(jnp.float32)
    return {"w_enc": w_enc, "w_fce": w_fce, "w_fcd": w_fcd, "w_dec": w_dec,
            "b_lat": b_lat, "b_dec": b_dec}


@jax.jit
def ae_forward(x, prepped):
    """Per-call path: a single pallas_call (no wrapper layout ops)."""
    B, D_in = x.shape
    L = prepped["w_enc"].shape[1]

    # Batch tiling: 128-row tiles when divisible (fills MXU rows, pipelines,
    # and lets the grid shard across v7x's two TensorCores); otherwise one
    # full-array block (legal since block == full array dims).
    tb = 128 if (B % 128 == 0) else B
    nb = B // tb

    x_spec = pl.BlockSpec((tb, D_in), lambda i: (i, 0))
    out_spec = pl.BlockSpec((tb, D_in), lambda i: (i, 0))
    # Grid-invariant blocks: weights/biases stay resident in VMEM across steps.
    w_enc_spec = pl.BlockSpec((D_in, L), lambda i: (0, 0))
    w_fce_spec = pl.BlockSpec((L, L), lambda i: (0, 0))
    w_fcd_spec = pl.BlockSpec((L, L), lambda i: (0, 0))
    w_dec_spec = pl.BlockSpec((L, D_in), lambda i: (0, 0))
    b_lat_spec = pl.BlockSpec((3, L), lambda i: (0, 0))
    b_dec_spec = pl.BlockSpec((1, D_in), lambda i: (0, 0))

    return pl.pallas_call(
        ae_forward_kernel,
        out_shape=jax.ShapeDtypeStruct((B, D_in), x.dtype),
        grid=(nb,),
        in_specs=[x_spec, w_enc_spec, w_fce_spec, w_fcd_spec, w_dec_spec,
                  b_lat_spec, b_dec_spec],
        out_specs=out_spec,
        compiler_params=pltpu.CompilerParams(
            dimension_semantics=("parallel",)),
    )(x, prepped["w_enc"], prepped["w_fce"], prepped["w_fcd"],
      prepped["w_dec"], prepped["b_lat"], prepped["b_dec"])


def ae_forward_reference(x, params):
    """Pure-JAX f32 reference mirroring the PyTorch forward."""
    h = x @ params["w_enc"].T + params["b_enc"]
    z = h @ params["w_fc_enc"].T + params["b_fc_enc"]
    zd = z @ params["w_fc_dec"].T + params["b_fc_dec"]
    y = zd @ params["w_dec"].T + params["b_dec"]
    return y


def init_params(key, d_in, latent_dim):
    ks = jax.random.split(key, 8)
    s = 0.02
    return {
        # encoder: Linear(d_in -> latent_dim)
        "w_enc": s * jax.random.normal(ks[0], (latent_dim, d_in), jnp.float32),
        "b_enc": s * jax.random.normal(ks[1], (latent_dim,), jnp.float32),
        # fc_enc: Linear(latent_dim -> latent_dim)
        "w_fc_enc": s * jax.random.normal(ks[2], (latent_dim, latent_dim), jnp.float32),
        "b_fc_enc": s * jax.random.normal(ks[3], (latent_dim,), jnp.float32),
        # fc_dec: Linear(latent_dim -> latent_dim)
        "w_fc_dec": s * jax.random.normal(ks[4], (latent_dim, latent_dim), jnp.float32),
        "b_fc_dec": s * jax.random.normal(ks[5], (latent_dim,), jnp.float32),
        # decoder: Linear(latent_dim -> d_in)
        "w_dec": s * jax.random.normal(ks[6], (d_in, latent_dim), jnp.float32),
        "b_dec": s * jax.random.normal(ks[7], (d_in,), jnp.float32),
    }


if __name__ == "__main__":
    # Shapes implied by the module: seq_len=8, latent_dim=32; the encoder
    # consumes a flattened (B, seq_len * feat) = (B, 64) input.  Batch is 256
    # (many small AE forwards batched into one call, per perf guidance) so the
    # grid exercises two 128-row tiles.
    seq_len = 8
    feat = 8
    d_in = seq_len * feat          # 64
    latent_dim = 32
    batch = 256

    key = jax.random.PRNGKey(0)
    k_x, k_p = jax.random.split(key)
    x = jax.random.normal(k_x, (batch, d_in), jnp.float32)
    params = init_params(k_p, d_in, latent_dim)

    prepped = prepare_params(params)          # one-time layout/dtype prep
    out = ae_forward(x, prepped)
    out = jax.block_until_ready(out)

    ref = ae_forward_reference(x, params)
    assert out.shape == (batch, d_in)
    # bf16 weights/activations on the MXU, f32 accumulation -> loose-ish tol.
    assert jnp.allclose(out, ref, atol=2e-3, rtol=2e-2), "mismatch vs reference"

    # Also check the small-batch (non-tiled) fallback path, B=2 as in the spec.
    x_small = jax.random.normal(jax.random.PRNGKey(1), (2, d_in), jnp.float32)
    out_small = jax.block_until_ready(ae_forward(x_small, prepped))
    ref_small = ae_forward_reference(x_small, params)
    assert jnp.allclose(out_small, ref_small, atol=2e-3, rtol=2e-2)

    print("KERNEL_OK")
</pallas_src>

<mosaic_0001>
module attributes {stable_mosaic.version = 11 : i64} {
  func.func @ae_forward_kernel(%arg0: i32, %arg1: memref<128x64xf32, #tpu.memory_space<vmem>>, %arg2: memref<64x32xbf16, #tpu.memory_space<vmem>>, %arg3: memref<32x32xbf16, #tpu.memory_space<vmem>>, %arg4: memref<32x32xbf16, #tpu.memory_space<vmem>>, %arg5: memref<32x64xbf16, #tpu.memory_space<vmem>>, %arg6: memref<3x32xf32, #tpu.memory_space<vmem>>, %arg7: memref<1x64xf32, #tpu.memory_space<vmem>>, %arg8: memref<128x64xf32, #tpu.memory_space<vmem>>) attributes {dimension_semantics = [#tpu.dimension_semantics<parallel>], iteration_bounds = array<i64: 2>, scalar_prefetch = 0 : i64, scratch_operands = 0 : i64, tpu.core_type = #tpu.core_type<tc>, window_params = [{transform_indices = @transform_0, window_bounds = array<i64: 128, 64>}, {pipeline_mode = #tpu.pipeline_mode<synchronous>, transform_indices = @transform_1, window_bounds = array<i64: 64, 32>}, {pipeline_mode = #tpu.pipeline_mode<synchronous>, transform_indices = @transform_2, window_bounds = array<i64: 32, 32>}, {pipeline_mode = #tpu.pipeline_mode<synchronous>, transform_indices = @transform_3, window_bounds = array<i64: 32, 32>}, {pipeline_mode = #tpu.pipeline_mode<synchronous>, transform_indices = @transform_4, window_bounds = array<i64: 32, 64>}, {pipeline_mode = #tpu.pipeline_mode<synchronous>, transform_indices = @transform_5, window_bounds = array<i64: 3, 32>}, {pipeline_mode = #tpu.pipeline_mode<synchronous>, transform_indices = @transform_6, window_bounds = array<i64: 1, 64>}, {transform_indices = @transform_7, window_bounds = array<i64: 128, 64>}]} {
    %c0 = arith.constant 0 : index
    %c0_0 = arith.constant 0 : index
    %0 = vector.load %arg1[%c0, %c0_0] : memref<128x64xf32, #tpu.memory_space<vmem>>, vector<128x64xf32>
    %1 = arith.truncf %0 : vector<128x64xf32> to vector<128x64xbf16>
    %c0_1 = arith.constant 0 : index
    %c0_2 = arith.constant 0 : index
    %2 = vector.load %arg2[%c0_1, %c0_2] : memref<64x32xbf16, #tpu.memory_space<vmem>>, vector<64x32xbf16>
    %cst = arith.constant dense<0.000000e+00> : vector<128x32xf32>
    %3 = tpu.matmul %1, %2, %cst {dimension_numbers = #tpu.dot_dimension_numbers<[1], [0], [0], [1], [0, 0, 1, 1], [], []>} : vector<128x64xbf16>, vector<64x32xbf16>, vector<128x32xf32> -> vector<128x32xf32>
    %c0_3 = arith.constant 0 : index
    %c0_4 = arith.constant 0 : index
    %4 = vector.load %arg6[%c0_3, %c0_4] : memref<3x32xf32, #tpu.memory_space<vmem>>, vector<1x32xf32>
    %5 = vector.broadcast %4 : vector<1x32xf32> to vector<128x32xf32>
    %6 = arith.addf %3, %5 : vector<128x32xf32>
    %7 = arith.truncf %6 : vector<128x32xf32> to vector<128x32xbf16>
    %c0_5 = arith.constant 0 : index
    %c0_6 = arith.constant 0 : index
    %8 = vector.load %arg3[%c0_5, %c0_6] : memref<32x32xbf16, #tpu.memory_space<vmem>>, vector<32x32xbf16>
    %cst_7 = arith.constant dense<0.000000e+00> : vector<128x32xf32>
    %9 = tpu.matmul %7, %8, %cst_7 {dimension_numbers = #tpu.dot_dimension_numbers<[1], [0], [0], [1], [0, 0, 1, 1], [], []>} : vector<128x32xbf16>, vector<32x32xbf16>, vector<128x32xf32> -> vector<128x32xf32>
    %c1 = arith.constant 1 : index
    %c0_8 = arith.constant 0 : index
    %10 = vector.load %arg6[%c1, %c0_8] : memref<3x32xf32, #tpu.memory_space<vmem>>, vector<1x32xf32>
    %11 = vector.broadcast %10 : vector<1x32xf32> to vector<128x32xf32>
    %12 = arith.addf %9, %11 : vector<128x32xf32>
    %13 = arith.truncf %12 : vector<128x32xf32> to vector<128x32xbf16>
    %c0_9 = arith.constant 0 : index
    %c0_10 = arith.constant 0 : index
    %14 = vector.load %arg4[%c0_9, %c0_10] : memref<32x32xbf16, #tpu.memory_space<vmem>>, vector<32x32xbf16>
    %cst_11 = arith.constant dense<0.000000e+00> : vector<128x32xf32>
    %15 = tpu.matmul %13, %14, %cst_11 {dimension_numbers = #tpu.dot_dimension_numbers<[1], [0], [0], [1], [0, 0, 1, 1], [], []>} : vector<128x32xbf16>, vector<32x32xbf16>, vector<128x32xf32> -> vector<128x32xf32>
    %c2 = arith.constant 2 : index
    %c0_12 = arith.constant 0 : index
    %16 = vector.load %arg6[%c2, %c0_12] : memref<3x32xf32, #tpu.memory_space<vmem>>, vector<1x32xf32>
    %17 = vector.broadcast %16 : vector<1x32xf32> to vector<128x32xf32>
    %18 = arith.addf %15, %17 : vector<128x32xf32>
    %19 = arith.truncf %18 : vector<128x32xf32> to vector<128x32xbf16>
    %c0_13 = arith.constant 0 : index
    %c0_14 = arith.constant 0 : index
    %20 = vector.load %arg5[%c0_13, %c0_14] : memref<32x64xbf16, #tpu.memory_space<vmem>>, vector<32x64xbf16>
    %cst_15 = arith.constant dense<0.000000e+00> : vector<128x64xf32>
    %21 = tpu.matmul %19, %20, %cst_15 {dimension_numbers = #tpu.dot_dimension_numbers<[1], [0], [0], [1], [0, 0, 1, 1], [], []>} : vector<128x32xbf16>, vector<32x64xbf16>, vector<128x64xf32> -> vector<128x64xf32>
    %c0_16 = arith.constant 0 : index
    %c0_17 = arith.constant 0 : index
    %22 = vector.load %arg7[%c0_16, %c0_17] : memref<1x64xf32, #tpu.memory_space<vmem>>, vector<1x64xf32>
    %23 = vector.broadcast %22 : vector<1x64xf32> to vector<128x64xf32>
    %24 = arith.addf %21, %23 : vector<128x64xf32>
    %c0_18 = arith.constant 0 : index
    %c0_19 = arith.constant 0 : index
    %25 = vector.load %arg8[%c0_18, %c0_19] : memref<128x64xf32, #tpu.memory_space<vmem>>, vector<128x64xf32>
    tpu.vector_store %arg8[%c0_18, %c0_19], %24 {strides = array<i32>} : memref<128x64xf32, #tpu.memory_space<vmem>>, vector<128x64xf32>,
    return
  }
  func.func @transform_0(%arg0: i32) -> (i32, i32) {
    %c0_i32 = arith.constant 0 : i32
    %c0_i32_0 = arith.constant 0 : i32
    return %arg0, %c0_i32 : i32, i32
  }
  func.func @transform_1(%arg0: i32) -> (i32, i32) {
    %c0_i32 = arith.constant 0 : i32
    %c0_i32_0 = arith.constant 0 : i32
    %c0_i32_1 = arith.constant 0 : i32
    return %c0_i32, %c0_i32_0 : i32, i32
  }
  func.func @transform_2(%arg0: i32) -> (i32, i32) {
    %c0_i32 = arith.constant 0 : i32
    %c0_i32_0 = arith.constant 0 : i32
    %c0_i32_1 = arith.constant 0 : i32
    return %c0_i32, %c0_i32_0 : i32, i32
  }
  func.func @transform_3(%arg0: i32) -> (i32, i32) {
    %c0_i32 = arith.constant 0 : i32
    %c0_i32_0 = arith.constant 0 : i32
    %c0_i32_1 = arith.constant 0 : i32
    return %c0_i32, %c0_i32_0 : i32, i32
  }
  func.func @transform_4(%arg0: i32) -> (i32, i32) {
    %c0_i32 = arith.constant 0 : i32
    %c0_i32_0 = arith.constant 0 : i32
    %c0_i32_1 = arith.constant 0 : i32
    return %c0_i32, %c0_i32_0 : i32, i32
  }
  func.func @transform_5(%arg0: i32) -> (i32, i32) {
    %c0_i32 = arith.constant 0 : i32
    %c0_i32_0 = arith.constant 0 : i32
    %c0_i32_1 = arith.constant 0 : i32
    return %c0_i32, %c0_i32_0 : i32, i32
  }
  func.func @transform_6(%arg0: i32) -> (i32, i32) {
    %c0_i32 = arith.constant 0 : i32
    %c0_i32_0 = arith.constant 0 : i32
    %c0_i32_1 = arith.constant 0 : i32
    return %c0_i32, %c0_i32_0 : i32, i32
  }
  func.func @transform_7(%arg0: i32) -> (i32, i32) {
    %c0_i32 = arith.constant 0 : i32
    %c0_i32_0 = arith.constant 0 : i32
    return %arg0, %c0_i32 : i32, i32
  }
}

</mosaic_0001>

<bundles_post_ra>
// kernel: ae_forward.1
= control target key start
LH: loop header
LB: loop body
LE: loop exit
PB: predicated region body
PF: predicated region fallthrough
CT: control target
= control target key end

     0   :  { %s940_s24 = smov 0   ;;  %s1090_s0 = inlined_call_operand.vmem [shape: f32[256,64], index: 0, kind: input, shape index: {}]   ;;  %s1091_s1 = inlined_call_operand.vmem [shape: bf16[64,32], index: 1, kind: input, shape index: {}]   ;;  %s1092_s2 = inlined_call_operand.vmem [shape: bf16[32,32], index: 2, kind: input, shape index: {}]   ;;  %s1093_s3 = inlined_call_operand.vmem [shape: bf16[32,32], index: 3, kind: input, shape index: {}]   ;;  %s1094_s4 = inlined_call_operand.vmem [shape: bf16[32,64], index: 4, kind: input, shape index: {}]   ;;  %s1095_s5 = inlined_call_operand.vmem [shape: f32[3,32], index: 5, kind: input, shape index: {}]   ;;  %s1096_s6 = inlined_call_operand.vmem [shape: f32[1,64], index: 6, kind: input, shape index: {}]   ;;  %s1097_s7 = inlined_call_operand.vmem [shape: f32[256,64], index: 7, kind: output, shape index: {}]  }
   0x1 LB: > { %s787_s25 = sadd.s32 4294967295, %s898_s24   ;;  %p791_p0 = scmp.ge.s32.totalorder %s898_s24, 1  ;;  %s898_s24 = sphi %s940_s24, %s17_s24  }
   0x2   : > { %p238_p1 = scmp.lt.s32.totalorder %s898_s24, 3 }
   0x4   : > { %p239_p2 = pnand %p791_p0, %p238_p1 }
   0x5   : > { %s792_s28 = sshll.u32 (!%p239_p2), %s787_s25, 4 }
   0x6   : > { %242 = sbr.rel (%p239_p2) target bundleno = 702 (0x2be), region = 48  ;;  %p271_p3 = scmp.lt.s32.totalorder (!%p239_p2), %s792_s28, 31 }
   0xb   : > { %v873_v0 = vld [vmem:[%s1091_s1 + $0x18] sm:$0xff]  ;;  %v872_v1 = vld [vmem:[%s1091_s1 + $0x10] sm:$0xff]  ;;  %s1099_s28 = smov (!%p271_p3, %s792_s28), 31  ;;  %v871_v2 = vld [vmem:[%s1091_s1 + $0x8] sm:$0xff]  ;;  %vm341_vm0 = vcmask 523264   ;;  %vm441_vm1 = vcmask 261120  }
   0xc   : > { %370 = vmatpush.bf16.msra.mxu0 %v873_v0  ;;  %s793_s8 = sshll.u32 %s1099_s28, 3  ;;  %v870_v3 = vld [vmem:[%s1091_s1] sm:$0xff]  ;;  %v875_v25 = vld [vmem:[%s1092_s2 + $0x8] sm:$0xff] }
   0xd   : > { %s965_s13 = scalar_lea.vmem %s1090_s0, %s793_s8  ;;  %472 = vmatpush.bf16.msra.mxu1 %v875_v25  ;;  %v874_v26 = vld [vmem:[%s1092_s2] sm:$0xff]  ;;  %s1053_s18 = scalar_lea.vmem %s1097_s7, %s793_s8 }
   0xe   : > { %v283_v4 = vld [vmem:[%s965_s13] sm:$0xff]  ;;  %v284_v5 = vld [vmem:[%s965_s13 + $0x8] sm:$0xff]  ;;  %v285_v7 = vld [vmem:[%s965_s13 + $0x10] sm:$0xff] }
   0xf   : > { %v299_v6 = vpack.c.bf16 %v284_v5, %v283_v4  ;;  %v286_v8 = vld [vmem:[%s965_s13 + $0x18] sm:$0xff]  ;;  %v287_v10 = vld [vmem:[%s965_s13 + $0x20] sm:$0xff]  ;;  %v288_v11 = vld [vmem:[%s965_s13 + $0x28] sm:$0xff] }
  0x10   : > { %371 = vmatpush.bf16.msra.mxu0 %v872_v1  ;;  %v300_v9 = vpack.c.bf16 %v286_v8, %v285_v7  ;;  %v301_v12 = vpack.c.bf16 %v288_v11, %v287_v10  ;;  %v289_v13 = vld [vmem:[%s965_s13 + $0x30] sm:$0xff]  ;;  %v290_v14 = vld [vmem:[%s965_s13 + $0x38] sm:$0xff]  ;;  %v291_v16 = vld [vmem:[%s965_s13 + $0x40] sm:$0xff] }
  0x11   : > { %v302_v15 = vpack.c.bf16 %v290_v14, %v289_v13  ;;  %v292_v17 = vld [vmem:[%s965_s13 + $0x48] sm:$0xff]  ;;  %v293_v19 = vld [vmem:[%s965_s13 + $0x50] sm:$0xff]  ;;  %v294_v20 = vld [vmem:[%s965_s13 + $0x58] sm:$0xff]  ;;  %473 = vmatpush.bf16.msra.mxu1 %v874_v26 }
  0x12   : > { %v303_v18 = vpack.c.bf16 %v292_v17, %v291_v16  ;;  %v304_v21 = vpack.c.bf16 %v294_v20, %v293_v19  ;;  %v295_v22 = vld [vmem:[%s965_s13 + $0x60] sm:$0xff]  ;;  %v296_v23 = vld [vmem:[%s965_s13 + $0x68] sm:$0xff]  ;;  %v297_v27 = vld [vmem:[%s965_s13 + $0x70] sm:$0xff] }
  0x13   : > { %v305_v24 = vpack.c.bf16 %v296_v23, %v295_v22  ;;  %v298_v28 = vld [vmem:[%s965_s13 + $0x78] sm:$0xff]  ;;  %v888_v31 = vld [vmem:[%s1095_s5] ss:$0 sm:$0xff]  ;;  %v889_v10 = vld [vmem:[%s1095_s5 + $0x1] ss:$0 sm:$0xff] }
  0x14   : > { %372 = vmatpush.bf16.msra.mxu0 %v871_v2  ;;  %v306_v29 = vpack.c.bf16 %v298_v28, %v297_v27  ;;  %v877_v2 = vld [vmem:[%s1093_s3 + $0x8] sm:$0xff]  ;;  %v876_v4 = vld [vmem:[%s1093_s3] sm:$0xff] }
  0x15   : > { %571 = vmatpush.bf16.msra.mxu2 %v877_v2 }
  0x18   : > { %373 = vmatpush.bf16.msra.mxu0 %v870_v3 }
  0x19   : > { %572 = vmatpush.bf16.msra.mxu2 %v876_v4 }
  0x1b   : > { %812 = vmatmul.msk.bf16.vlgmr.msra.gmra.mxu0 %vm341_vm0, %v299_v6 }
  0x2b   : > { %813 = vmatmul.msk.bf16.gmra.mxu0 %vm341_vm0, %v300_v9 }
  0x3b   : > { %814 = vmatmul.msk.bf16.gmra.mxu0 %vm341_vm0, %v301_v12 }
  0x4b   : > { %815 = vmatmul.msk.bf16.gmra.mxu0 %vm341_vm0, %v302_v15 }
  0x5b   : > { %816 = vmatmul.msk.bf16.gmra.mxu0 %vm341_vm0, %v303_v18 }
  0x6b   : > { %817 = vmatmul.msk.bf16.gmra.mxu0 %vm341_vm0, %v304_v21 }
  0x7b   : > { %818 = vmatmul.msk.bf16.gmra.mxu0 %vm341_vm0, %v305_v24 }
  0x8b   : > { %819 = vmatmul.msk.bf16.gmra.mxu0 %vm341_vm0, %v306_v29 }
  0x98   : > { %v375_v30 = vpop.f32.mrf.mxu0 }
  0x99   : > { %v376_v33 = vadd.f32 %v888_v31, %v375_v30 }
  0xa0   : > { %v377_v32 = vpop.f32.mrf.mxu0 }
  0xa1   : > { %v378_v34 = vadd.f32 %v888_v31, %v377_v32 }
  0xa3   : > { %v415_v35 = vpack.c.bf16 %v378_v34, %v376_v33 }
  0xa5   : > { %828 = vmatmul.msk.bf16.vlgmr.msra.gmra.mxu1 %vm441_vm1, %v415_v35 }
  0xa8   : > { %v380_v36 = vpop.f32.mrf.mxu0 }
  0xa9   : > { %v381_v38 = vadd.f32 %v888_v31, %v380_v36 }
  0xb0   : > { %v382_v37 = vpop.f32.mrf.mxu0 }
  0xb1   : > { %v383_v39 = vadd.f32 %v888_v31, %v382_v37 }
  0xb3   : > { %v416_v40 = vpack.c.bf16 %v383_v39, %v381_v38 }
  0xb5   : > { %829 = vmatmul.msk.bf16.gmra.mxu1 %vm441_vm1, %v416_v40 }
  0xb8   : > { %v385_v41 = vpop.f32.mrf.mxu0 }
  0xb9   : > { %v386_v43 = vadd.f32 %v888_v31, %v385_v41 }
  0xc0   : > { %v387_v42 = vpop.f32.mrf.mxu0 }
  0xc1   : > { %v388_v44 = vadd.f32 %v888_v31, %v387_v42 }
  0xc3   : > { %v417_v45 = vpack.c.bf16 %v388_v44, %v386_v43 }
  0xc5   : > { %830 = vmatmul.msk.bf16.gmra.mxu1 %vm441_vm1, %v417_v45 }
  0xc8   : > { %v390_v46 = vpop.f32.mrf.mxu0 }
  0xc9   : > { %v391_v48 = vadd.f32 %v888_v31, %v390_v46  ;;  %v879_v46 = vld [vmem:[%s1094_s4 + $0x8] sm:$0xff] }
  0xca   : > { %672 = vmatpush.bf16.msra.mxu3 %v879_v46 }
  0xd0   : > { %v392_v47 = vpop.f32.mrf.mxu0 }
  0xd1   : > { %v393_v49 = vadd.f32 %v888_v31, %v392_v47 }
  0xd3   : > { %v418_v50 = vpack.c.bf16 %v393_v49, %v391_v48  ;;  %v878_v48 = vld [vmem:[%s1094_s4] sm:$0xff] }
  0xd4   : > { %673 = vmatpush.bf16.msra.mxu3 %v878_v48 }
  0xd5   : > { %831 = vmatmul.msk.bf16.gmra.mxu1 %vm441_vm1, %v418_v50 }
  0xd8   : > { %v395_v51 = vpop.f32.mrf.mxu0 }
  0xd9   : > { %v396_v53 = vadd.f32 %v888_v31, %v395_v51 }
  0xe0   : > { %v397_v52 = vpop.f32.mrf.mxu0 }
  0xe1   : > { %v398_v54 = vadd.f32 %v888_v31, %v397_v52 }
  0xe3   : > { %v419_v55 = vpack.c.bf16 %v398_v54, %v396_v53  ;;  %v890_v53 = vld [vmem:[%s1095_s5 + $0x2] ss:$0 sm:$0xff] }
  0xe5   : > { %832 = vmatmul.msk.bf16.gmra.mxu1 %vm441_vm1, %v419_v55 }
  0xe8   : > { %v400_v56 = vpop.f32.mrf.mxu0 }
  0xe9   : > { %v401_v58 = vadd.f32 %v888_v31, %v400_v56 }
  0xf0   : > { %v402_v57 = vpop.f32.mrf.mxu0 }
  0xf1   : > { %v403_v59 = vadd.f32 %v888_v31, %v402_v57 }
  0xf3   : > { %v420_v60 = vpack.c.bf16 %v403_v59, %v401_v58 }
  0xf5   : > { %833 = vmatmul.msk.bf16.gmra.mxu1 %vm441_vm1, %v420_v60 }
  0xf8   : > { %v405_v61 = vpop.f32.mrf.mxu0 }
  0xf9   : > { %v406_v63 = vadd.f32 %v888_v31, %v405_v61 }
 0x100   : > { %v407_v62 = vpop.f32.mrf.mxu0 }
 0x101   : > { %v408_v0 = vadd.f32 %v888_v31, %v407_v62 }
 0x103   : > { %v421_v1 = vpack.c.bf16 %v408_v0, %v406_v63 }
 0x105   : > { %834 = vmatmul.msk.bf16.gmra.mxu1 %vm441_vm1, %v421_v1 }
 0x108   : > { %v410_v3 = vpop.f32.mrf.mxu0 }
 0x109   : > { %v411_v6 = vadd.f32 %v888_v31, %v410_v3 }
 0x110   : > { %v412_v5 = vpop.f32.mrf.mxu0 }
 0x111   : > { %v413_v7 = vadd.f32 %v888_v31, %v412_v5 }
 0x113   : > { %v422_v8 = vpack.c.bf16 %v413_v7, %v411_v6 }
 0x115   : > { %835 = vmatmul.msk.bf16.gmra.mxu1 %vm441_vm1, %v422_v8 }
 0x122   : > { %v475_v9 = vpop.f32.mrf.mxu1 }
 0x123   : > { %v476_v12 = vadd.f32 %v889_v10, %v475_v9 }
 0x12a   : > { %v477_v11 = vpop.f32.mrf.mxu1 }
 0x12b   : > { %v478_v13 = vadd.f32 %v889_v10, %v477_v11 }
 0x12d   : > { %v515_v14 = vpack.c.bf16 %v478_v13, %v476_v12 }
 0x12f   : > { %844 = vmatmul.msk.bf16.vlgmr.msra.gmra.mxu2 %vm441_vm1, %v515_v14 }
 0x132   : > { %v480_v15 = vpop.f32.mrf.mxu1 }
 0x133   : > { %v481_v17 = vadd.f32 %v889_v10, %v480_v15 }
 0x13a   : > { %v482_v16 = vpop.f32.mrf.mxu1 }
 0x13b   : > { %v483_v18 = vadd.f32 %v889_v10, %v482_v16 }
 0x13d   : > { %v516_v19 = vpack.c.bf16 %v483_v18, %v481_v17 }
 0x13f   : > { %845 = vmatmul.msk.bf16.gmra.mxu2 %vm441_vm1, %v516_v19 }
 0x142   : > { %v485_v20 = vpop.f32.mrf.mxu1 }
 0x143   : > { %v486_v22 = vadd.f32 %v889_v10, %v485_v20 }
 0x14a   : > { %v487_v21 = vpop.f32.mrf.mxu1 }
 0x14b   : > { %v488_v23 = vadd.f32 %v889_v10, %v487_v21 }
 0x14d   : > { %v517_v24 = vpack.c.bf16 %v488_v23, %v486_v22 }
 0x14f   : > { %846 = vmatmul.msk.bf16.gmra.mxu2 %vm441_vm1, %v517_v24 }
 0x152   : > { %v490_v25 = vpop.f32.mrf.mxu1 }
 0x153   : > { %v491_v27 = vadd.f32 %v889_v10, %v490_v25 }
 0x15a   : > { %v492_v26 = vpop.f32.mrf.mxu1 }
 0x15b   : > { %v493_v28 = vadd.f32 %v889_v10, %v492_v26 }
 0x15d   : > { %v518_v29 = vpack.c.bf16 %v493_v28, %v491_v27 }
 0x15f   : > { %847 = vmatmul.msk.bf16.gmra.mxu2 %vm441_vm1, %v518_v29  ;;  %v891_v29 = vld [vmem:[%s1096_s6] ss:$0 sm:$0xff] }
 0x162   : > { %v495_v30 = vpop.f32.mrf.mxu1 }
 0x163   : > { %v496_v32 = vadd.f32 %v889_v10, %v495_v30 }
 0x16a   : > { %v497_v31 = vpop.f32.mrf.mxu1 }
 0x16b   : > { %v498_v33 = vadd.f32 %v889_v10, %v497_v31 }
 0x16d   : > { %v519_v34 = vpack.c.bf16 %v498_v33, %v496_v32 }
 0x16f   : > { %848 = vmatmul.msk.bf16.gmra.mxu2 %vm441_vm1, %v519_v34 }
 0x172   : > { %v500_v35 = vpop.f32.mrf.mxu1 }
 0x173   : > { %v501_v37 = vadd.f32 %v889_v10, %v500_v35 }
 0x17a   : > { %v502_v36 = vpop.f32.mrf.mxu1 }
 0x17b   : > { %v503_v38 = vadd.f32 %v889_v10, %v502_v36 }
 0x17d   : > { %v520_v39 = vpack.c.bf16 %v503_v38, %v501_v37 }
 0x17f   : > { %849 = vmatmul.msk.bf16.gmra.mxu2 %vm441_vm1, %v520_v39 }
 0x182   : > { %v505_v40 = vpop.f32.mrf.mxu1 }
 0x183   : > { %v506_v42 = vadd.f32 %v889_v10, %v505_v40 }
 0x18a   : > { %v507_v41 = vpop.f32.mrf.mxu1 }
 0x18b   : > { %v508_v43 = vadd.f32 %v889_v10, %v507_v41 }
 0x18d   : > { %v521_v44 = vpack.c.bf16 %v508_v43, %v506_v42 }
 0x18f   : > { %850 = vmatmul.msk.bf16.gmra.mxu2 %vm441_vm1, %v521_v44 }
 0x192   : > { %v510_v45 = vpop.f32.mrf.mxu1 }
 0x193   : > { %v511_v49 = vadd.f32 %v889_v10, %v510_v45 }
 0x19a   : > { %v512_v47 = vpop.f32.mrf.mxu1 }
 0x19b   : > { %v513_v50 = vadd.f32 %v889_v10, %v512_v47 }
 0x19d   : > { %v522_v51 = vpack.c.bf16 %v513_v50, %v511_v49 }
 0x19f   : > { %851 = vmatmul.msk.bf16.gmra.mxu2 %vm441_vm1, %v522_v51 }
 0x1b2   : > { %v574_v52 = vpop.f32.mrf.mxu2 }
 0x1b3   : > { %v575_v55 = vadd.f32 %v890_v53, %v574_v52 }
 0x1ba   : > { %v576_v54 = vpop.f32.mrf.mxu2 }
 0x1bb   : > { %v577_v56 = vadd.f32 %v890_v53, %v576_v54 }
 0x1bd   : > { %v614_v57 = vpack.c.bf16 %v577_v56, %v575_v55 }
 0x1bf   : > { %860 = vmatmul.msk.bf16.vlgmr.msra.gmra.mxu3 %vm441_vm1, %v614_v57 }
 0x1c2   : > { %v579_v58 = vpop.f32.mrf.mxu2 }
 0x1c3   : > { %v580_v60 = vadd.f32 %v890_v53, %v579_v58 }
 0x1ca   : > { %v581_v59 = vpop.f32.mrf.mxu2 }
 0x1cb   : > { %v582_v61 = vadd.f32 %v890_v53, %v581_v59 }
 0x1cd   : > { %v615_v62 = vpack.c.bf16 %v582_v61, %v580_v60 }
 0x1cf   : > { %861 = vmatmul.msk.bf16.gmra.mxu3 %vm441_vm1, %v615_v62 }
 0x1d2   : > { %v584_v63 = vpop.f32.mrf.mxu2 }
 0x1d3   : > { %v585_v1 = vadd.f32 %v890_v53, %v584_v63 }
 0x1da   : > { %v586_v0 = vpop.f32.mrf.mxu2 }
 0x1db   : > { %v587_v2 = vadd.f32 %v890_v53, %v586_v0 }
 0x1dd   : > { %v616_v3 = vpack.c.bf16 %v587_v2, %v585_v1 }
 0x1df   : > { %862 = vmatmul.msk.bf16.gmra.mxu3 %vm441_vm1, %v616_v3 }
 0x1e2   : > { %v589_v4 = vpop.f32.mrf.mxu2 }
 0x1e3   : > { %v590_v6 = vadd.f32 %v890_v53, %v589_v4 }
 0x1ea   : > { %v591_v5 = vpop.f32.mrf.mxu2 }
 0x1eb   : > { %v592_v7 = vadd.f32 %v890_v53, %v591_v5 }
 0x1ed   : > { %v617_v8 = vpack.c.bf16 %v592_v7, %v590_v6 }
 0x1ef   : > { %863 = vmatmul.msk.bf16.gmra.mxu3 %vm441_vm1, %v617_v8 }
 0x1f2   : > { %v594_v9 = vpop.f32.mrf.mxu2 }
 0x1f3   : > { %v595_v11 = vadd.f32 %v890_v53, %v594_v9 }
 0x1fa   : > { %v596_v10 = vpop.f32.mrf.mxu2 }
 0x1fb   : > { %v597_v12 = vadd.f32 %v890_v53, %v596_v10 }
 0x1fd   : > { %v618_v13 = vpack.c.bf16 %v597_v12, %v595_v11 }
 0x1ff   : > { %864 = vmatmul.msk.bf16.gmra.mxu3 %vm441_vm1, %v618_v13 }
 0x202   : > { %v599_v14 = vpop.f32.mrf.mxu2 }
 0x203   : > { %v600_v16 = vadd.f32 %v890_v53, %v599_v14 }
 0x20a   : > { %v601_v15 = vpop.f32.mrf.mxu2 }
 0x20b   : > { %v602_v17 = vadd.f32 %v890_v53, %v601_v15 }
 0x20d   : > { %v619_v18 = vpack.c.bf16 %v602_v17, %v600_v16 }
 0x20f   : > { %865 = vmatmul.msk.bf16.gmra.mxu3 %vm441_vm1, %v619_v18 }
 0x212   : > { %v604_v19 = vpop.f32.mrf.mxu2 }
 0x213   : > { %v605_v21 = vadd.f32 %v890_v53, %v604_v19 }
 0x21a   : > { %v606_v20 = vpop.f32.mrf.mxu2 }
 0x21b   : > { %v607_v22 = vadd.f32 %v890_v53, %v606_v20 }
 0x21d   : > { %v620_v23 = vpack.c.bf16 %v607_v22, %v605_v21 }
 0x21f   : > { %866 = vmatmul.msk.bf16.gmra.mxu3 %vm441_vm1, %v620_v23 }
 0x222   : > { %v609_v24 = vpop.f32.mrf.mxu2 }
 0x223   : > { %v610_v26 = vadd.f32 %v890_v53, %v609_v24 }
 0x22a   : > { %v611_v25 = vpop.f32.mrf.mxu2 }
 0x22b   : > { %v612_v27 = vadd.f32 %v890_v53, %v611_v25 }
 0x22d   : > { %v621_v28 = vpack.c.bf16 %v612_v27, %v610_v26 }
 0x22f   : > { %867 = vmatmul.msk.bf16.gmra.mxu3 %vm441_vm1, %v621_v28 }
 0x242   : > { %v675_v30 = vpop.f32.mrf.mxu3 }
 0x243   : > { %v676_v31 = vadd.f32 %v891_v29, %v675_v30 }
 0x245   : > { %715 = vst.msk [vmem:[%s1053_s18] sm:$0xff] %vm341_vm0, %v676_v31 }
 0x24a   : > { %v677_v32 = vpop.f32.mrf.mxu3 }
 0x24b   : > { %v678_v33 = vadd.f32 %v891_v29, %v677_v32 }
 0x24d   : > { %716 = vst.msk [vmem:[%s1053_s18 + $0x8] sm:$0xff] %vm341_vm0, %v678_v33 }
 0x252   : > { %v680_v34 = vpop.f32.mrf.mxu3 }
 0x253   : > { %v681_v35 = vadd.f32 %v891_v29, %v680_v34 }
 0x255   : > { %717 = vst.msk [vmem:[%s1053_s18 + $0x10] sm:$0xff] %vm341_vm0, %v681_v35 }
 0x25a   : > { %v682_v36 = vpop.f32.mrf.mxu3 }
 0x25b   : > { %v683_v37 = vadd.f32 %v891_v29, %v682_v36 }
 0x25d   : > { %718 = vst.msk [vmem:[%s1053_s18 + $0x18] sm:$0xff] %vm341_vm0, %v683_v37 }
 0x262   : > { %v685_v38 = vpop.f32.mrf.mxu3 }
 0x263   : > { %v686_v39 = vadd.f32 %v891_v29, %v685_v38 }
 0x265   : > { %719 = vst.msk [vmem:[%s1053_s18 + $0x20] sm:$0xff] %vm341_vm0, %v686_v39 }
 0x26a   : > { %v687_v40 = vpop.f32.mrf.mxu3 }
 0x26b   : > { %v688_v41 = vadd.f32 %v891_v29, %v687_v40 }
 0x26d   : > { %720 = vst.msk [vmem:[%s1053_s18 + $0x28] sm:$0xff] %vm341_vm0, %v688_v41 }
 0x272   : > { %v690_v42 = vpop.f32.mrf.mxu3 }
 0x273   : > { %v691_v43 = vadd.f32 %v891_v29, %v690_v42 }
 0x275   : > { %721 = vst.msk [vmem:[%s1053_s18 + $0x30] sm:$0xff] %vm341_vm0, %v691_v43 }
 0x27a   : > { %v692_v44 = vpop.f32.mrf.mxu3 }
 0x27b   : > { %v693_v45 = vadd.f32 %v891_v29, %v692_v44 }
 0x27d   : > { %722 = vst.msk [vmem:[%s1053_s18 + $0x38] sm:$0xff] %vm341_vm0, %v693_v45 }
 0x282   : > { %v695_v46 = vpop.f32.mrf.mxu3 }
 0x283   : > { %v696_v47 = vadd.f32 %v891_v29, %v695_v46 }
 0x285   : > { %723 = vst.msk [vmem:[%s1053_s18 + $0x40] sm:$0xff] %vm341_vm0, %v696_v47 }
 0x28a   : > { %v697_v48 = vpop.f32.mrf.mxu3 }
 0x28b   : > { %v698_v49 = vadd.f32 %v891_v29, %v697_v48 }
 0x28d   : > { %724 = vst.msk [vmem:[%s1053_s18 + $0x48] sm:$0xff] %vm341_vm0, %v698_v49 }
 0x292   : > { %v700_v50 = vpop.f32.mrf.mxu3 }
 0x293   : > { %v701_v51 = vadd.f32 %v891_v29, %v700_v50 }
 0x295   : > { %725 = vst.msk [vmem:[%s1053_s18 + $0x50] sm:$0xff] %vm341_vm0, %v701_v51 }
 0x29a   : > { %v702_v52 = vpop.f32.mrf.mxu3 }
 0x29b   : > { %v703_v53 = vadd.f32 %v891_v29, %v702_v52 }
 0x29d   : > { %726 = vst.msk [vmem:[%s1053_s18 + $0x58] sm:$0xff] %vm341_vm0, %v703_v53 }
 0x2a2   : > { %v705_v54 = vpop.f32.mrf.mxu3 }
 0x2a3   : > { %v706_v55 = vadd.f32 %v891_v29, %v705_v54 }
 0x2a5   : > { %727 = vst.msk [vmem:[%s1053_s18 + $0x60] sm:$0xff] %vm341_vm0, %v706_v55 }
 0x2aa   : > { %v707_v56 = vpop.f32.mrf.mxu3 }
 0x2ab   : > { %v708_v57 = vadd.f32 %v891_v29, %v707_v56 }
 0x2ad   : > { %728 = vst.msk [vmem:[%s1053_s18 + $0x68] sm:$0xff] %vm341_vm0, %v708_v57 }
 0x2b2   : > { %v710_v58 = vpop.f32.mrf.mxu3 }
 0x2b3   : > { %v711_v59 = vadd.f32 %v891_v29, %v710_v58 }
 0x2b5   : > { %729 = vst.msk [vmem:[%s1053_s18 + $0x70] sm:$0xff] %vm341_vm0, %v711_v59 }
 0x2ba   : > { %v712_v60 = vpop.f32.mrf.mxu3 }
 0x2bb   : > { %v713_v61 = vadd.f32 %v891_v29, %v712_v60 }
 0x2bd   : > { %730 = vst.msk [vmem:[%s1053_s18 + $0x78] sm:$0xff] %vm341_vm0, %v713_v61 }
 0x2be PF: > { %s17_s24 = sadd.s32 1, %s898_s24  }
 0x2bf   : > { %p14_p4 = scmp.ge.s32.totalorder %s17_s24, 4  }
 0x2c1   :  { %16 = sbr.rel (!%p14_p4) target bundleno = 1 (0x1), region = 78 }

</bundles_post_ra>
